<compile_context>
chip_gen: v7x
topology: tpu7x:2x2x1
jax: 0.10.0
libtpu: 0.0.40
codegen_flags: <defaults>
</compile_context>

<pallas_src>
import math

import jax
import jax.numpy as jnp
from jax.experimental import pallas as pl
from jax.experimental.pallas import tpu as pltpu

HALF_DTYPE = jnp.bfloat16

# Default row tile: big enough to amortize per-grid-step overhead (~0.35 us).
DEFAULT_ROW_TILE = 1024

# Keep double-buffered input/output blocks + f32 temporaries comfortably
# inside the scoped-VMEM default on v5e/v6e/v7x.
_VMEM_BUDGET_BYTES = 12 * 1024 * 1024


def _round_up(n, m):
    return ((n + m - 1) // m) * m


def _rope_kernel(x_ref, pos_ref, sfreq_ref, o_ref):
    # x_ref:     (tm, D)   native input dtype
    # pos_ref:   (tm, 1)   positions (int or float)
    # sfreq_ref: (1, D)    float32, = distance_scale * concat(-inv_freq, inv_freq)
    # o_ref:     (tm, D)   half (bf16) output
    d = x_ref.shape[-1]
    half = d // 2

    # Angle math in f32 (bf16 positions > 256 lose integer precision).
    pos = pos_ref[...].astype(jnp.float32)        # (tm, 1)
    ang = pos * sfreq_ref[...]                    # (tm, D) = [-f, f] per row
    cos = jnp.cos(ang)                            # [cos f, cos f]
    sin = jnp.sin(ang)                            # [-sin f, sin f]

    x = x_ref[...].astype(jnp.float32)            # (tm, D)

    # swap_halves(x) = concat(x_hi, x_lo): XLU lane-roll when D is a whole
    # number of 128-lane vregs, otherwise an in-register concat of the halves.
    if d % 128 == 0:
        rot = pltpu.roll(x, shift=half, axis=1)
    else:
        rot = jnp.concatenate([x[:, half:], x[:, :half]], axis=-1)

    # concat(x_lo*cos - x_hi*sin, x_hi*cos + x_lo*sin), one lane-dense store.
    o_ref[...] = (x * cos + rot * sin).astype(o_ref.dtype)


def rotary_embedding(x, x_pos, inv_freq, distance_scale=1.0,
                     tm=DEFAULT_ROW_TILE, out_dtype=HALF_DTYPE):
    """x: (..., dim), x_pos: (...) -> (..., dim), elementwise over leading dims."""
    orig_shape = x.shape
    d = orig_shape[-1]
    assert d % 2 == 0, "rotary dim must be even"
    half = d // 2
    assert inv_freq.shape[-1] == half

    s = math.prod(orig_shape[:-1]) if len(orig_shape) > 1 else 1

    x2 = x.reshape(s, d)                       # native dtype, no pre-cast
    pos2 = x_pos.reshape(s, 1)

    # Fold distance_scale and the rotate-half sign into a single f32 row:
    #   cos(pos * [-f, f]) = [cos, cos],  sin(pos * [-f, f]) = [-sin, sin].
    inv = inv_freq.reshape(half).astype(jnp.float32)
    sfreq = (jnp.concatenate([-inv, inv]) * jnp.float32(distance_scale)).reshape(1, d)

    # Row tile: multiple of 16 (bf16 packs 2 rows / sublane), capped by VMEM
    # budget (covers large D) and by the padded row count.
    in_b = jnp.dtype(x.dtype).itemsize
    out_b = jnp.dtype(out_dtype).itemsize
    bytes_per_row = d * (in_b + out_b + 12) + 512      # I/O + f32 temps + pos pad
    tm_cap = max(16, (_VMEM_BUDGET_BYTES // (2 * bytes_per_row)) // 16 * 16)
    tm = max(16, min(int(tm), tm_cap, _round_up(s, 16)))
    tm = _round_up(tm, 16)

    s_pad = _round_up(s, tm)
    if s_pad != s:
        x2 = jnp.pad(x2, ((0, s_pad - s), (0, 0)))
        pos2 = jnp.pad(pos2, ((0, s_pad - s), (0, 0)))

    out = pl.pallas_call(
        _rope_kernel,
        out_shape=jax.ShapeDtypeStruct((s_pad, d), out_dtype),
        grid_spec=pltpu.PrefetchScalarGridSpec(
            num_scalar_prefetch=0,
            grid=(s_pad // tm,),
            in_specs=[
                pl.BlockSpec((tm, d), lambda i: (i, 0)),   # x rows
                pl.BlockSpec((tm, 1), lambda i: (i, 0)),   # positions
                pl.BlockSpec((1, d), lambda i: (0, 0)),    # signed freqs (broadcast)
            ],
            out_specs=pl.BlockSpec((tm, d), lambda i: (i, 0)),
        ),
        compiler_params=pltpu.CompilerParams(
            dimension_semantics=("parallel",),
        ),
    )(x2, pos2, sfreq)

    if s_pad != s:
        out = out[:s]
    return out.reshape(orig_shape)


def make_inv_freq(dim, base=10000.0):
    # Same construction as the module's __init__, kept in float32 for accuracy
    # (the kernel only casts the final output to the half dtype).
    ar = jnp.arange(0, dim, 2, dtype=jnp.float32)
    return (1.0 / (base ** (ar / dim))).astype(jnp.float32)


def rotary_embedding_ref(x, x_pos, inv_freq, distance_scale=1.0):
    # Pure-JAX reference mirroring the PyTorch forward (f32 internal math).
    pos = x_pos.astype(jnp.float32) * jnp.float32(distance_scale)
    freqs = pos[..., None] * inv_freq.astype(jnp.float32)[None, :]
    emb = jnp.concatenate([freqs, freqs], axis=-1)
    xf = x.astype(jnp.float32)
    half = x.shape[-1] // 2
    rot = jnp.concatenate([-xf[..., half:], xf[..., :half]], axis=-1)
    return (xf * jnp.cos(emb) + rot * jnp.sin(emb)).astype(HALF_DTYPE)


def _check(x, x_pos, inv_freq, distance_scale=1.0):
    out = rotary_embedding(x, x_pos, inv_freq, distance_scale=distance_scale)
    out = jax.block_until_ready(out)
    ref = rotary_embedding_ref(x, x_pos, inv_freq, distance_scale=distance_scale)
    assert out.shape == x.shape and out.dtype == HALF_DTYPE
    assert jnp.allclose(out.astype(jnp.float32), ref.astype(jnp.float32),
                        atol=2e-2, rtol=2e-2)


if __name__ == "__main__":
    key = jax.random.PRNGKey(0)
    distance_scale = 1.0

    # 1) Small demo shape consistent with the module: (batch, seq, dim).
    batch, seq, dim = 2, 8, 32
    kx, kp = jax.random.split(key)
    x = jax.random.normal(kx, (batch, seq, dim), dtype=jnp.float32).astype(HALF_DTYPE)
    x_pos = jnp.broadcast_to(jnp.arange(seq, dtype=jnp.int32)[None, :], (batch, seq))
    inv_freq = make_inv_freq(dim)
    _check(x, x_pos, inv_freq, distance_scale)

    # 2) Leading dims that do NOT divide the row tile (exercises the padding /
    #    tail path) and non-trivial positions.
    batch2, seq2 = 3, 7
    kx2, kx3 = jax.random.split(kp)
    x_b = jax.random.normal(kx2, (batch2, seq2, dim), dtype=jnp.float32).astype(HALF_DTYPE)
    pos_b = jnp.broadcast_to(
        (jnp.arange(seq2, dtype=jnp.int32) + 300)[None, :], (batch2, seq2))
    _check(x_b, pos_b, inv_freq, distance_scale)

    # 3) dim = 128 (whole vreg lane width) to exercise the pltpu.roll fast path.
    batch3, seq3, dim3 = 2, 16, 128
    x_c = jax.random.normal(kx3, (batch3, seq3, dim3), dtype=jnp.float32).astype(HALF_DTYPE)
    pos_c = jnp.broadcast_to(jnp.arange(seq3, dtype=jnp.int32)[None, :], (batch3, seq3))
    inv_freq3 = make_inv_freq(dim3)
    _check(x_c, pos_c, inv_freq3, distance_scale)

    print("KERNEL_OK")
</pallas_src>

<mosaic_0001>
module attributes {stable_mosaic.version = 11 : i64} {
  func.func @_rope_kernel(%arg0: i32, %arg1: memref<16x32xbf16, #tpu.memory_space<vmem>>, %arg2: memref<16x1xi32, #tpu.memory_space<vmem>>, %arg3: memref<1x32xf32, #tpu.memory_space<vmem>>, %arg4: memref<16x32xbf16, #tpu.memory_space<vmem>>) attributes {dimension_semantics = [#tpu.dimension_semantics<parallel>], iteration_bounds = array<i64: 1>, scalar_prefetch = 0 : i64, scratch_operands = 0 : i64, tpu.core_type = #tpu.core_type<tc>, window_params = [{transform_indices = @transform_0, window_bounds = array<i64: 16, 32>}, {transform_indices = @transform_1, window_bounds = array<i64: 16, 1>}, {pipeline_mode = #tpu.pipeline_mode<synchronous>, transform_indices = @transform_2, window_bounds = array<i64: 1, 32>}, {transform_indices = @transform_3, window_bounds = array<i64: 16, 32>}]} {
    %c0 = arith.constant 0 : index
    %c0_0 = arith.constant 0 : index
    %0 = vector.load %arg2[%c0, %c0_0] : memref<16x1xi32, #tpu.memory_space<vmem>>, vector<16x1xi32>
    %1 = arith.sitofp %0 : vector<16x1xi32> to vector<16x1xf32>
    %c0_1 = arith.constant 0 : index
    %c0_2 = arith.constant 0 : index
    %2 = vector.load %arg3[%c0_1, %c0_2] : memref<1x32xf32, #tpu.memory_space<vmem>>, vector<1x32xf32>
    %3 = vector.broadcast %1 : vector<16x1xf32> to vector<16x32xf32>
    %4 = vector.broadcast %2 : vector<1x32xf32> to vector<16x32xf32>
    %5 = arith.mulf %3, %4 : vector<16x32xf32>
    %6 = math.cos %5 : vector<16x32xf32>
    %7 = math.sin %5 : vector<16x32xf32>
    %c0_3 = arith.constant 0 : index
    %c0_4 = arith.constant 0 : index
    %8 = vector.load %arg1[%c0_3, %c0_4] : memref<16x32xbf16, #tpu.memory_space<vmem>>, vector<16x32xbf16>
    %9 = arith.extf %8 : vector<16x32xbf16> to vector<16x32xf32>
    %10 = vector.extract_strided_slice %9 {offsets = [0, 16], sizes = [16, 16], strides = [1, 1]} : vector<16x32xf32> to vector<16x16xf32>
    %11 = vector.extract_strided_slice %9 {offsets = [0, 0], sizes = [16, 16], strides = [1, 1]} : vector<16x32xf32> to vector<16x16xf32>
    %12 = tpu.concatenate %10, %11 in 1 : vector<16x16xf32>, vector<16x16xf32> -> vector<16x32xf32>
    %13 = arith.mulf %9, %6 : vector<16x32xf32>
    %14 = arith.mulf %12, %7 : vector<16x32xf32>
    %15 = arith.addf %13, %14 : vector<16x32xf32>
    %16 = arith.truncf %15 : vector<16x32xf32> to vector<16x32xbf16>
    %c0_5 = arith.constant 0 : index
    %c0_6 = arith.constant 0 : index
    %17 = vector.load %arg4[%c0_5, %c0_6] : memref<16x32xbf16, #tpu.memory_space<vmem>>, vector<16x32xbf16>
    tpu.vector_store %arg4[%c0_5, %c0_6], %16 {strides = array<i32>} : memref<16x32xbf16, #tpu.memory_space<vmem>>, vector<16x32xbf16>,
    return
  }
  func.func @transform_0(%arg0: i32) -> (i32, i32) {
    %c0_i32 = arith.constant 0 : i32
    %c0_i32_0 = arith.constant 0 : i32
    return %arg0, %c0_i32 : i32, i32
  }
  func.func @transform_1(%arg0: i32) -> (i32, i32) {
    %c0_i32 = arith.constant 0 : i32
    %c0_i32_0 = arith.constant 0 : i32
    return %arg0, %c0_i32 : i32, i32
  }
  func.func @transform_2(%arg0: i32) -> (i32, i32) {
    %c0_i32 = arith.constant 0 : i32
    %c0_i32_0 = arith.constant 0 : i32
    %c0_i32_1 = arith.constant 0 : i32
    return %c0_i32, %c0_i32_0 : i32, i32
  }
  func.func @transform_3(%arg0: i32) -> (i32, i32) {
    %c0_i32 = arith.constant 0 : i32
    %c0_i32_0 = arith.constant 0 : i32
    return %arg0, %c0_i32 : i32, i32
  }
}

</mosaic_0001>

<bundles_post_ra>
// kernel: tpu_custom_call.1
= control target key start
LH: loop header
LB: loop body
LE: loop exit
PB: predicated region body
PF: predicated region fallthrough
CT: control target
= control target key end

     0   :  { %v594_v3 = vmov 0   ;;  %s734_s0 = inlined_call_operand.vmem [shape: bf16[16,32], index: 0, kind: input, shape index: {}]   ;;  %s735_s1 = inlined_call_operand.vmem [shape: s32[16,1], index: 1, kind: input, shape index: {}]   ;;  %s736_s2 = inlined_call_operand.vmem [shape: f32[1,32], index: 2, kind: input, shape index: {}]   ;;  %s737_s3 = inlined_call_operand.hbm [shape: bf16[16,32], index: 3, kind: output, shape index: {}]  }
   0x1   :  { %v15_v0 = vld [vmem:[%s735_s1] sm:$0xff]  ;;  %v16_v1 = vld [vmem:[%s735_s1 + $0x8] sm:$0xff]  ;;  %551 = vset.pattern.permute.xlu0 %v594_v3 }
   0x2   :  { %v635_v2 = vld [vmem:[%s734_s0] sm:$0xff]   ;;  %v17_v4 = vcvt.s32.f32 %v15_v0 }
   0x3   :  { %v529_v5 = vunpack.c.l.bf16 %v635_v2  ;;  %v530_v6 = vunpack.c.h.bf16 %v635_v2 }
   0x4   :  { %8 = vsyncpa [#allocation3], 0  ;;  %22 = vperm.xlu0 %551, %v17_v4   ;;  %v18_v7 = vcvt.s32.f32 %v16_v1  ;;  %s595_s1 = smov 112   ;;  %s596_s0 = smov 16   ;;  %v506_v9 = vld [vmem:[%s736_s2] ss:$0 sm:$0xff] }
   0x5   :  { %v552_v8 = vpack.i.bf16 %v530_v6, %v529_v5  ;;  %v597_v30 = vmov 683565275   ;;  %v598_v34 = vmov 2475754826   ;;  %v599_v36 = vmov 2131351028  }
   0x6   :  { %v600_v38 = vmov 2102212464   ;;  %v601_v40 = vmov 920167782   ;;  %v602_v47 = vmov 1326507024  }
   0x7   :  { %553 = vrot.lane.b32.xlu1 %v552_v8, %s595_s1  ;;  %s603_s2 = smov [#allocation2]  }
   0x8   :  { %27 = vperm.xlu0 %551, %v18_v7   ;;  %s495_s20 = sshll.u32 %s603_s2, 4  ;;  %s496_s20 = int_to_ptr.vmem [resolvable:$true] %s495_s20 }
   0x9   :  { %s570_s21 = scalar_lea.vmem %s496_s20, 128  ;;  %p575_p1 = scmp.lt.s32.totalorder %s496_s20, %s496_s20 }
   0xa   :  { %p571_p0 = scmp.ne.s32.totalorder %s496_s20, %s570_s21  ;;  %p576_p2 = scmp.lt.s32.totalorder %s570_s21, %s570_s21 }
   0xb   :  { %558 = vrot.lane.b32.xlu1 %v552_v8, %s596_s0 }
   0xc   :  { %p577_p3 = por %p576_p2, %p575_p1 }
   0xe   :  { %p578_p4 = pnand %p577_p3, %p571_p0 }
  0x83   :  { %v23_v10 = vpop.permute.xlu0 %22 }
  0x84   :  { %v646_v11 = vmul.f32 %v506_v9, %v23_v10 }
  0x86   :  { %v38_v12 = vand.u32 2147483647, %v646_v11  ;;  %v41_v13 = vand.u32 2139095040, %v646_v11  ;;  %vm40_vm14 = vcmp.lt.s32.totalorder %v646_v11, 0 }
  0x87   :  { %v28_v14 = vpop.permute.xlu0 %27 }
  0x88   :  { %v42_v15 = vshrl.u32 %v41_v13, 23  ;;  %v650_v16 = vmul.f32 %v506_v9, %v28_v14  ;;  %v45_v17 = vand.u32 8388607, %v38_v12  ;;  %vm39_vm15 = vcmp.le.f32.partialorder %v38_v12, 0.7853982 }
  0x8a   :  { %v507_v18 = vadd.s32 4294967169, %v42_v15  ;;  %v144_v19 = vand.u32 2139095040, %v650_v16  ;;  %v46_v21 = vor.u32 8388608, %v45_v17  ;;  %v141_v23 = vand.u32 2147483647, %v650_v16 }
  0x8c   :  { %v48_v20 = vadd.s32 1, %v507_v18  ;;  %v145_v22 = vshrl.u32 %v144_v19, 23  ;;  %v656_v28 = vshll.u32 %v46_v21, 8  ;;  %v148_v32 = vand.u32 8388607, %v141_v23 }
  0x8e   :  { %vm49_vm0 = vcmp.gt.s32.totalorder %v48_v20, 0  ;;  %v511_v25 = vadd.s32 4294967169, %v145_v22  ;;  %v149_v62 = vor.u32 8388608, %v148_v32 }
  0x8f   :  { %v50_v24 = vsel %vm49_vm0, %v48_v20, 0  ;;  %vm143_vm0 = vcmp.lt.s32.totalorder %v650_v16, 0 }
  0x90   :  { %v51_v26 = vshrl.u32 %v50_v24, 5  ;;  %v52_v27 = vand.u32 31, %v50_v24  ;;  %v151_v33 = vadd.s32 1, %v511_v25  ;;  %v189_v17 = vshll.u32 %v149_v62, 8 }
  0x92   :  { %v53_v29 = vsub.s32 32, %v52_v27  ;;  %v55_v31 = vshll.u32 %v597_v30, %v52_v27  ;;  %v58_v35 = vshll.u32 %v598_v34, %v52_v27  ;;  %v61_v37 = vshll.u32 %v599_v36, %v52_v27 }
  0x93   :  { %v64_v39 = vshll.u32 %v600_v38, %v52_v27  ;;  %v67_v41 = vshll.u32 %v601_v40, %v52_v27  ;;  %vm70_vm1 = vcmp.lt.s32.totalorder %v51_v26, 1  ;;  %vm72_vm2 = vcmp.lt.s32.totalorder %v51_v26, 3 }
  0x94   :  { %v56_v42 = vshrl.u32 %v598_v34, %v53_v29  ;;  %v59_v43 = vshrl.u32 %v599_v36, %v53_v29  ;;  %v62_v44 = vshrl.u32 %v600_v38, %v53_v29  ;;  %v54_v45 = vshrl.u32 %v597_v30, %v53_v29 }
  0x95   :  { %v65_v46 = vshrl.u32 %v601_v40, %v53_v29  ;;  %v68_v48 = vshrl.u32 %v602_v47, %v53_v29  ;;  %vm152_vm3 = vcmp.gt.s32.totalorder %v151_v33, 0  ;;  %vm73_vm4 = vcmp.lt.s32.totalorder %v51_v26, 4 }
  0x96   :  { %v57_v49 = vor.u32 %v56_v42, %v55_v31  ;;  %v60_v50 = vor.u32 %v59_v43, %v58_v35  ;;  %v63_v51 = vor.u32 %v62_v44, %v61_v37  ;;  %v153_v54 = vsel %vm152_vm3, %v151_v33, 0 }
  0x97   :  { %v66_v52 = vor.u32 %v65_v46, %v64_v39  ;;  %v69_v53 = vor.u32 %v68_v48, %v67_v41  ;;  %vm71_vm5 = vcmp.lt.s32.totalorder %v51_v26, 2  ;;  %v155_v1 = vand.u32 31, %v153_v54 }
  0x98   :  { %v74_v55 = vsel %vm70_vm1, %v54_v45, %v57_v49  ;;  %v75_v56 = vsel %vm73_vm4, %v63_v51, 2102212464  ;;  %v78_v57 = vsel %vm70_vm1, %v57_v49, %v60_v50  ;;  %v82_v58 = vsel %vm70_vm1, %v60_v50, %v63_v51 }
  0x99   :  { %v76_v59 = vsel %vm72_vm2, %v60_v50, %v75_v56  ;;  %v79_v60 = vsel %vm73_vm4, %v66_v52, 920167782  ;;  %v83_v61 = vsel %vm73_vm4, %v69_v53, 1326507024  ;;  %v154_v14 = vshrl.u32 %v153_v54, 5 }
  0x9a   :  { %v80_v63 = vsel %vm72_vm2, %v63_v51, %v79_v60  ;;  %v84_v0 = vsel %vm72_vm2, %v66_v52, %v83_v61  ;;  %v77_v3 = vsel %vm71_vm5, %v74_v55, %v76_v59  ;;  %v156_v15 = vsub.s32 32, %v155_v1 }
  0x9b   :  { %v81_v4 = vsel %vm71_vm5, %v78_v57, %v80_v63  ;;  %v85_v7 = vsel %vm71_vm5, %v82_v58, %v84_v0  ;;  %v93_v18 = vmul.u32 %v656_v28, %v77_v3  ;;  %v158_v19 = vshll.u32 %v597_v30, %v155_v1 }
  0x9c   :  { %v669_v8 = vmul.u32.u64.low %v656_v28, %v85_v7  ;;  %v670_v9 = vmul.u32.u64.high %v656_v28, %v85_v7, %v669_v8  ;;  %v673_v10 = vmul.u32.u64.low %v656_v28, %v81_v4  ;;  %v674_v13 = vmul.u32.u64.high %v656_v28, %v81_v4, %v673_v10 }
  0x9d   :  { %v161_v20 = vshll.u32 %v598_v34, %v155_v1  ;;  %v164_v21 = vshll.u32 %v599_v36, %v155_v1  ;;  %v159_v22 = vshrl.u32 %v598_v34, %v156_v15  ;;  %v162_v24 = vshrl.u32 %v599_v36, %v156_v15 }
  0x9e   :  { %v165_v25 = vshrl.u32 %v600_v38, %v156_v15  ;;  %v167_v26 = vshll.u32 %v600_v38, %v155_v1  ;;  %vm95_vm6 = vc.u32 %v670_v9, %v673_v10  ;;  %v96_v27 = vadd.s32 1, %v674_v13 }
  0x9f   :  { %v168_v29 = vshrl.u32 %v601_v40, %v156_v15  ;;  %v170_v31 = vshll.u32 %v601_v40, %v155_v1  ;;  %v160_v32 = vor.u32 %v159_v22, %v158_v19  ;;  %v163_v33 = vor.u32 %v162_v24, %v161_v20 }
  0xa0   :  { %v166_v35 = vor.u32 %v165_v25, %v164_v21  ;;  %v171_v37 = vshrl.u32 %v602_v47, %v156_v15  ;;  %v97_v28 = vsel %vm95_vm6, %v96_v27, %v674_v13  ;;  %vm173_vm7 = vcmp.lt.s32.totalorder %v154_v14, 1 }
  0xa1   :  { %v169_v39 = vor.u32 %v168_v29, %v167_v26  ;;  %vm176_vm8 = vcmp.lt.s32.totalorder %v154_v14, 4  ;;  %v98_v34 = vadd.s32 %v97_v28, %v93_v18  ;;  %vm175_vm9 = vcmp.lt.s32.totalorder %v154_v14, 3 }
  0xa2   :  { %v172_v36 = vor.u32 %v171_v37, %v170_v31  ;;  %v178_v38 = vsel %vm176_vm8, %v166_v35, 2102212464  ;;  %v157_v41 = vshrl.u32 %v597_v30, %v156_v15  ;;  %v181_v42 = vsel %vm173_vm7, %v160_v32, %v163_v33 }
  0xa3   :  { %v182_v43 = vsel %vm176_vm8, %v169_v39, 920167782  ;;  %v185_v44 = vsel %vm173_vm7, %v163_v33, %v166_v35  ;;  %v99_v45 = vadd.s32 536870912, %v98_v34  ;;  %vm174_vm10 = vcmp.lt.s32.totalorder %v154_v14, 2 }
  0xa4   :  { %v183_v40 = vsel %vm175_vm9, %v166_v35, %v182_v43  ;;  %v186_v46 = vsel %vm176_vm8, %v172_v36, 1326507024  ;;  %v177_v48 = vsel %vm173_vm7, %v157_v41, %v160_v32  ;;  %v179_v47 = vsel %vm175_vm9, %v163_v33, %v178_v38 }
  0xa5   :  { %v184_v49 = vsel %vm174_vm10, %v181_v42, %v183_v40  ;;  %v187_v50 = vsel %vm175_vm9, %v169_v39, %v186_v46  ;;  %v100_v51 = vshrl.u32 %v99_v45, 30  ;;  %v180_v57 = vsel %vm174_vm10, %v177_v48, %v179_v47 }
  0xa6   :  { %v188_v52 = vsel %vm174_vm10, %v185_v44, %v187_v50  ;;  %v684_v53 = vmul.u32.u64.low %v189_v17, %v184_v49  ;;  %v685_v54 = vmul.u32.u64.high %v189_v17, %v184_v49, %v684_v53  ;;  %v196_v60 = vmul.u32 %v189_v17, %v180_v57  ;;  %v699_v44 = vpop.permute.xlu1 %553 }
  0xa7   :  { %v687_v55 = vmul.u32.u64.low %v189_v17, %v188_v52  ;;  %v688_v56 = vmul.u32.u64.high %v189_v17, %v188_v52, %v687_v55  ;;  %v101_v30 = vshll.u32 %v100_v51, 30  ;;  %v94_v15 = vadd.s32 %v673_v10, %v670_v9 }
  0xa8   :  { %v199_v59 = vadd.s32 1, %v685_v54  ;;  %v124_v37 = vsub.s32 4, %v100_v51  ;;  %vm470_vm1 = vcmask 130048   ;;  %vm142_vm2 = vcmp.le.f32.partialorder %v141_v23, 0.7853982 }
  0xa9   :  { %v102_v58 = vsub.s32 %v98_v34, %v101_v30  ;;  %vm198_vm11 = vc.u32 %v688_v56, %v684_v53  ;;  %v197_v9 = vadd.s32 %v684_v53, %v688_v56  ;;  %vm130_vm9 = vweird.f32 %v646_v11 }
  0xaa   :  { %v200_v62 = vsel %vm198_vm11, %v199_v59, %v685_v54  ;;  %v125_v43 = vsel %vm40_vm14, %v124_v37, %v100_v51  ;;  %v702_v52 = vpop.permute.xlu1 %558  ;;  %v555_v51 = vunpack.i.l.bf16 %v699_v44  ;;  %vm487_vm10 = vcmask 257024  }
  0xab   :  { %v104_v61 = vsub.s32 0, %v102_v58  ;;  %v201_v63 = vadd.s32 %v200_v62, %v196_v60  ;;  %v127_v48 = vsel %vm39_vm15, 0, %v125_v43  ;;  %v560_v56 = vunpack.i.l.bf16 %v702_v52 }
  0xac   :  { %v337_v53 = vadd.s32 3, %v127_v48  ;;  %v131_v30 = vand.u32 3, %v127_v48 }
  0xad   :  { %v508_v0 = vmin.u32 %v104_v61, %v102_v58  ;;  %v202_v1 = vadd.s32 536870912, %v201_v63 }
  0xae   :  { %v338_v57 = vand.u32 3, %v337_v53  ;;  %vm136_vm3 = vcmp.eq.s32.totalorder %v131_v30, 2  ;;  %vm133_vm5 = vcmp.eq.s32.totalorder %v131_v30, 0  ;;  %vm132_vm7 = vcmp.lt.s32.totalorder %v131_v30, 2 }
  0xaf   :  { %v106_v3 = vclz %v508_v0  ;;  %v203_v4 = vshrl.u32 %v202_v1, 30  ;;  %v471_v0 = vsel %vm470_vm1, %v555_v51, %v560_v56 }
  0xb0   :  { %vm343_vm4 = vcmp.eq.s32.totalorder %v338_v57, 2  ;;  %vm340_vm6 = vcmp.eq.s32.totalorder %v338_v57, 0  ;;  %vm339_vm8 = vcmp.lt.s32.totalorder %v338_v57, 2 }
  0xb1   :  { %v509_v7 = vadd.s32 4294967294, %v106_v3  ;;  %v204_v8 = vshll.u32 %v203_v4, 30  ;;  %v227_v55 = vsub.s32 4, %v203_v4 }
  0xb3   :  { %vm510_vm12 = vcmp.lt.s32.totalorder %v509_v7, 0  ;;  %v205_v14 = vsub.s32 %v201_v63, %v204_v8  ;;  %v228_v59 = vsel %vm143_vm0, %v227_v55, %v203_v4 }
  0xb4   :  { %v109_v13 = vsel %vm510_vm12, 0, %v509_v7  ;;  %v230_v1 = vsel %vm142_vm2, 0, %v228_v59 }
  0xb5   :  { %v110_v18 = vsub.s32 32, %v109_v13  ;;  %v114_v17 = vsub.s32 4294967266, %v109_v13  ;;  %v207_v19 = vsub.s32 0, %v205_v14  ;;  %v111_v20 = vshll.u32 %v102_v58, %v109_v13 }
  0xb7   :  { %v112_v21 = vshrl.u32 %v94_v15, %v110_v18  ;;  %v115_v22 = vadd.s32 127, %v114_v17  ;;  %v512_v24 = vmin.u32 %v207_v19, %v205_v14  ;;  %v441_v15 = vadd.s32 3, %v230_v1 }
  0xb9   :  { %v113_v25 = vor.u32 %v112_v21, %v111_v20  ;;  %v116_v26 = vshll.u32 %v115_v22, 23  ;;  %v209_v27 = vclz %v512_v24  ;;  %v234_v21 = vand.u32 3, %v230_v1 }
  0xba   :  { %v442_v22 = vand.u32 3, %v441_v15 }
  0xbb   :  { %v117_v29 = vor.u32 4788187, %v116_v26  ;;  %v513_v31 = vadd.s32 4294967294, %v209_v27  ;;  %v120_v33 = vcvt.s32.f32 %v113_v25  ;;  %vm239_vm11 = vcmp.eq.s32.totalorder %v234_v21, 2 }
  0xbc   :  { %vm447_vm12 = vcmp.eq.s32.totalorder %v442_v22, 2 }
  0xbd   :  { %v118_v32 = vand.u32 2147483647, %v117_v29  ;;  %vm514_vm13 = vcmp.lt.s32.totalorder %v513_v31, 0  ;;  %v556_v29 = vunpack.i.h.bf16 %v699_v44 }
  0xbe   :  { %v212_v28 = vsel %vm514_vm13, 0, %v513_v31  ;;  %vm236_vm13 = vcmp.eq.s32.totalorder %v234_v21, 0 }
  0xbf   :  { %v121_v35 = vmul.f32 %v120_v33, %v118_v32  ;;  %v213_v10 = vsub.s32 32, %v212_v28  ;;  %v217_v39 = vsub.s32 4294967266, %v212_v28  ;;  %v214_v36 = vshll.u32 %v205_v14, %v212_v28 }
  0xc1   :  { %v122_v34 = vxor.u32 2147483648, %v121_v35  ;;  %v215_v38 = vshrl.u32 %v197_v9, %v213_v10  ;;  %v218_v41 = vadd.s32 127, %v217_v39 }
  0xc3   :  { %v123_v42 = vsel %vm40_vm14, %v122_v34, %v121_v35  ;;  %v216_v40 = vor.u32 %v215_v38, %v214_v36  ;;  %v219_v46 = vshll.u32 %v218_v41, 23  ;;  %vm444_vm14 = vcmp.eq.s32.totalorder %v442_v22, 0 }
  0xc4   :  { %v126_v45 = vsel %vm39_vm15, %v646_v11, %v123_v42  ;;  %v561_v11 = vunpack.i.h.bf16 %v702_v52  ;;  %vm235_vm15 = vcmp.lt.s32.totalorder %v234_v21, 2 }
  0xc5   :  { %562 = vcosq.f32 %v126_v45  ;;  %v220_v47 = vor.u32 4788187, %v219_v46  ;;  %v223_v50 = vcvt.s32.f32 %v216_v40 }
  0xc6   :  { %564 = vsinq.f32 %v126_v45  ;;  %v472_v34 = vsel %vm470_vm1, %v556_v29, %v561_v11 }
  0xc7   :  { %v221_v49 = vand.u32 2147483647, %v220_v47 }
  0xc9   :  { %v224_v54 = vmul.f32 %v223_v50, %v221_v49 }
  0xcb   :  { %v225_v12 = vxor.u32 2147483648, %v224_v54 }
  0xcd   :  { %v226_v58 = vsel %vm143_vm0, %v225_v12, %v224_v54  ;;  %vm443_vm0 = vcmp.lt.s32.totalorder %v442_v22, 2 }
  0xce   :  { %v229_v61 = vsel %vm142_vm2, %v650_v16, %v226_v58  ;;  %vm233_vm2 = vweird.f32 %v650_v16 }
  0xcf   :  { %v563_v60 = vpop.eup %562  ;;  %566 = vcosq.f32 %v229_v61 }
  0xd0   :  { %v565_v62 = vpop.eup %564  ;;  %v137_v63 = vxor.u32 2147483648, %v563_v60  ;;  %568 = vsinq.f32 %v229_v61 }
  0xd1   :  { %v134_v3 = vxor.u32 2147483648, %v565_v62 }
  0xd2   :  { %v138_v7 = vsel %vm136_vm3, %v137_v63, %v565_v62  ;;  %v345_v8 = vsel %vm343_vm4, %v137_v63, %v565_v62 }
  0xd3   :  { %v135_v23 = vsel %vm133_vm5, %v563_v60, %v134_v3  ;;  %v342_v4 = vsel %vm340_vm6, %v563_v60, %v134_v3 }
  0xd4   :  { %v139_v13 = vsel %vm132_vm7, %v135_v23, %v138_v7  ;;  %v346_v14 = vsel %vm339_vm8, %v342_v4, %v345_v8 }
  0xd5   :  { %v140_v18 = vsel %vm130_vm9, nan, %v139_v13  ;;  %v347_v17 = vsel %vm130_vm9, nan, %v346_v14 }
  0xd6   :  { %v473_v19 = vmul.f32 %v529_v5, %v140_v18  ;;  %v475_v20 = vmul.f32 %v471_v0, %v347_v17 }
  0xd8   :  { %v477_v24 = vadd.f32 %v475_v20, %v473_v19 }
  0xd9   :  { %v567_v25 = vpop.eup %566 }
  0xda   :  { %v525_v26 = vpack.c.bf16 %v477_v24, %v477_v24  ;;  %v569_v27 = vpop.eup %568  ;;  %v240_v31 = vxor.u32 2147483648, %v567_v25 }
  0xdb   :  { %v237_v32 = vxor.u32 2147483648, %v569_v27 }
  0xdc   :  { %488 = vst.msk [vmem:[#allocation2] sm:$0xf] %vm487_vm10, %v525_v26  ;;  %v241_v5 = vsel %vm239_vm11, %v240_v31, %v569_v27  ;;  %v449_v33 = vsel %vm447_vm12, %v240_v31, %v569_v27 }
  0xdd   :  { %v238_v35 = vsel %vm236_vm13, %v567_v25, %v237_v32  ;;  %v446_v37 = vsel %vm444_vm14, %v567_v25, %v237_v32 }
  0xde   :  { %v242_v28 = vsel %vm235_vm15, %v238_v35, %v241_v5  ;;  %v450_v9 = vsel %vm443_vm0, %v446_v37, %v449_v33 }
  0xdf   :  { %v243_v10 = vsel %vm233_vm2, nan, %v242_v28  ;;  %v451_v39 = vsel %vm233_vm2, nan, %v450_v9 }
  0xe0   :  { %v474_v36 = vmul.f32 %v530_v6, %v243_v10  ;;  %v476_v38 = vmul.f32 %v472_v34, %v451_v39 }
  0xe2   :  { %v478_v41 = vadd.f32 %v476_v38, %v474_v36 }
  0xe4   :  { %v526_v42 = vpack.c.bf16 %v478_v41, %v478_v41 }
  0xe6   :  { %489 = vst.msk [vmem:[#allocation2 + $0x4] sm:$0xf] %vm487_vm10, %v526_v42 }
  0xe7   :  { %581 = shalt.err (!%p578_p4)
}
  0xe8   :  { %s582_s24 = scalar_lea.hbm %s737_s3, 128 }
  0xe9   :  { %p583_p5 = scmp.ne.s32.totalorder %s737_s3, %s582_s24  ;;  %p586_p6 = scmp.lt.u32.totalorder %s582_s24, %s737_s3 }
  0xeb   :  { %p588_p7 = pnand %p586_p6, %p583_p5 }
  0xed   :  { %591 = shalt.err (!%p588_p7)
}
  0xee   :  { %s604_s29 = smov 64   ;;  %s605_s30 = smov 4  }
  0xef   :  { %501 = dma.vmem_to_hbm [thread:$0]  %s496_s20, 128, %s737_s3, [#allocation3], %s604_s29, %s604_s29, %s605_s30  }
  0xf0   :  { %592 = dma.done.wait [#allocation3], 128  }
  0xf1   :  { %593 = vsyncadd [#allocation3], 4294967168 }
  0xf2   :  { %505 = vsyncpa [#allocation3], 1 }

</bundles_post_ra>
